<compile_context>
chip_gen: v6e
topology: v6e:2x2x1
jax: 0.10.0
libtpu: 0.0.40
codegen_flags: <defaults>
</compile_context>

<pallas_src>
import jax
import jax.numpy as jnp
from jax.experimental import pallas as pl
from jax.experimental.pallas import tpu as pltpu

SUBLANE = 8  # sublane alignment for the batch (second-to-last) dim


def _round_up(n, m):
    return ((n + m - 1) // m) * m


def qnet_kernel(x_ref, w1_ref, b1_ref, w2_ref, b2_ref, w3_ref, b3_ref, o_ref):
    # Whole MLP for one batch tile: 3 MXU matmuls + VPU bias/ReLU, all in f32.
    x = x_ref[...]
    h1 = jnp.dot(x, w1_ref[...], preferred_element_type=jnp.float32) + b1_ref[...]
    h1 = jnp.maximum(h1, 0.0)
    h2 = jnp.dot(h1, w2_ref[...], preferred_element_type=jnp.float32) + b2_ref[...]
    h2 = jnp.maximum(h2, 0.0)
    out = jnp.dot(h2, w3_ref[...], preferred_element_type=jnp.float32) + b3_ref[...]
    o_ref[...] = out.astype(o_ref.dtype)


def _choose_batch_tile(B, tile_b):
    # Aim for >=2 grid steps on batched calls (v7x: 2 TensorCores, axis is
    # "parallel"); single tile for tiny/inference batches. Always sublane-aligned.
    tb = min(tile_b, _round_up(pl.cdiv(B, 2), SUBLANE))
    return max(SUBLANE, _round_up(tb, SUBLANE))


def qnetwork_forward(x, params, *, tile_b=2048):
    """x: [B, state_dim] float32. params: w1,b1,w2,b2,w3,b3 with [in,out]/[1,out]."""
    w1, b1, w2, b2, w3, b3 = (params["w1"], params["b1"], params["w2"],
                              params["b2"], params["w3"], params["b3"])
    B, state_dim = x.shape
    action_dim = w3.shape[1]

    tb = _choose_batch_tile(B, tile_b)
    B_p = _round_up(B, tb)
    grid = (B_p // tb,)

    # Only the batch axis ever needs padding (rows of zeros, sliced off after).
    x_p = x if B_p == B else jnp.pad(x, ((0, B_p - B), (0, 0)))

    # Weights/biases: full-array, grid-invariant blocks -> fetched once, stay
    # resident in VMEM across all grid steps (~40 KB total).
    def resident(a):
        return pl.BlockSpec(a.shape, lambda i: (0, 0))

    out_p = pl.pallas_call(
        qnet_kernel,
        out_shape=jax.ShapeDtypeStruct((B_p, action_dim), jnp.float32),
        grid=grid,
        in_specs=[
            pl.BlockSpec((tb, state_dim), lambda i: (i, 0)),  # x: batch-tiled, unpadded K
            resident(w1), resident(b1),
            resident(w2), resident(b2),
            resident(w3), resident(b3),
        ],
        out_specs=pl.BlockSpec((tb, action_dim), lambda i: (i, 0)),  # unpadded N
        compiler_params=pltpu.CompilerParams(
            dimension_semantics=("parallel",)),  # shard batch tiles across TCs (v7x)
    )(x_p, w1, b1, w2, b2, w3, b3)

    return out_p if B_p == B else out_p[:B]


def init_params(key, state_dim, action_dim, hidden=64):
    """Deterministic init mirroring PyTorch nn.Linear (U[-1/sqrt(fan_in), +])."""
    def linear(k, fan_in, fan_out):
        kw, kb = jax.random.split(k)
        bound = 1.0 / jnp.sqrt(float(fan_in))
        w = jax.random.uniform(kw, (fan_in, fan_out), jnp.float32, -bound, bound)
        b = jax.random.uniform(kb, (1, fan_out), jnp.float32, -bound, bound)
        return w, b

    k1, k2, k3 = jax.random.split(key, 3)
    w1, b1 = linear(k1, state_dim, hidden)
    w2, b2 = linear(k2, hidden, hidden)
    w3, b3 = linear(k3, hidden, action_dim)
    return {"w1": w1, "b1": b1, "w2": w2, "b2": b2, "w3": w3, "b3": b3}


def qnetwork_ref(x, p):
    h1 = jnp.maximum(x @ p["w1"] + p["b1"], 0.0)
    h2 = jnp.maximum(h1 @ p["w2"] + p["b2"], 0.0)
    return h2 @ p["w3"] + p["b3"]


if __name__ == "__main__":
    key = jax.random.PRNGKey(0)
    k_param, k_x = jax.random.split(key)

    # Small synthetic env dims; batch chosen to exercise the multi-step
    # (2-grid-step) batched path while staying tiny.
    batch, state_dim, action_dim, hidden = 512, 8, 4, 64
    params = init_params(k_param, state_dim, action_dim, hidden=hidden)
    x = jax.random.normal(k_x, (batch, state_dim), jnp.float32)

    out = jax.block_until_ready(qnetwork_forward(x, params))
    ref = qnetwork_ref(x, params)

    assert out.shape == (batch, action_dim)
    assert jnp.allclose(out, ref, atol=1e-4, rtol=1e-4)

    # Also check the small-batch (single-tile) inference path.
    x_small = x[:8]
    out_small = jax.block_until_ready(qnetwork_forward(x_small, params))
    assert out_small.shape == (8, action_dim)
    assert jnp.allclose(out_small, ref[:8], atol=1e-4, rtol=1e-4)

    print("KERNEL_OK")
</pallas_src>

<mosaic_0001>
module attributes {stable_mosaic.version = 11 : i64} {
  func.func @qnet_kernel(%arg0: i32, %arg1: memref<256x8xf32, #tpu.memory_space<vmem>>, %arg2: memref<8x64xf32, #tpu.memory_space<vmem>>, %arg3: memref<1x64xf32, #tpu.memory_space<vmem>>, %arg4: memref<64x64xf32, #tpu.memory_space<vmem>>, %arg5: memref<1x64xf32, #tpu.memory_space<vmem>>, %arg6: memref<64x4xf32, #tpu.memory_space<vmem>>, %arg7: memref<1x4xf32, #tpu.memory_space<vmem>>, %arg8: memref<256x4xf32, #tpu.memory_space<vmem>>) attributes {dimension_semantics = [#tpu.dimension_semantics<parallel>], iteration_bounds = array<i64: 2>, scalar_prefetch = 0 : i64, scratch_operands = 0 : i64, tpu.core_type = #tpu.core_type<tc>, window_params = [{transform_indices = @transform_0, window_bounds = array<i64: 256, 8>}, {pipeline_mode = #tpu.pipeline_mode<synchronous>, transform_indices = @transform_1, window_bounds = array<i64: 8, 64>}, {pipeline_mode = #tpu.pipeline_mode<synchronous>, transform_indices = @transform_2, window_bounds = array<i64: 1, 64>}, {pipeline_mode = #tpu.pipeline_mode<synchronous>, transform_indices = @transform_3, window_bounds = array<i64: 64, 64>}, {pipeline_mode = #tpu.pipeline_mode<synchronous>, transform_indices = @transform_4, window_bounds = array<i64: 1, 64>}, {pipeline_mode = #tpu.pipeline_mode<synchronous>, transform_indices = @transform_5, window_bounds = array<i64: 64, 4>}, {pipeline_mode = #tpu.pipeline_mode<synchronous>, transform_indices = @transform_6, window_bounds = array<i64: 1, 4>}, {transform_indices = @transform_7, window_bounds = array<i64: 256, 4>}]} {
    %c0 = arith.constant 0 : index
    %c0_0 = arith.constant 0 : index
    %0 = vector.load %arg1[%c0, %c0_0] : memref<256x8xf32, #tpu.memory_space<vmem>>, vector<256x8xf32>
    %c0_1 = arith.constant 0 : index
    %c0_2 = arith.constant 0 : index
    %1 = vector.load %arg2[%c0_1, %c0_2] : memref<8x64xf32, #tpu.memory_space<vmem>>, vector<8x64xf32>
    %cst = arith.constant dense<0.000000e+00> : vector<256x64xf32>
    %2 = tpu.matmul %0, %1, %cst {dimension_numbers = #tpu.dot_dimension_numbers<[1], [0], [0], [1], [0, 0, 1, 1], [], []>} : vector<256x8xf32>, vector<8x64xf32>, vector<256x64xf32> -> vector<256x64xf32>
    %c0_3 = arith.constant 0 : index
    %c0_4 = arith.constant 0 : index
    %3 = vector.load %arg3[%c0_3, %c0_4] : memref<1x64xf32, #tpu.memory_space<vmem>>, vector<1x64xf32>
    %4 = vector.broadcast %3 : vector<1x64xf32> to vector<256x64xf32>
    %5 = arith.addf %2, %4 : vector<256x64xf32>
    %cst_5 = arith.constant 0.000000e+00 : f32
    %6 = vector.broadcast %cst_5 : f32 to vector<256x64xf32>
    %7 = arith.maximumf %5, %6 : vector<256x64xf32>
    %c0_6 = arith.constant 0 : index
    %c0_7 = arith.constant 0 : index
    %8 = vector.load %arg4[%c0_6, %c0_7] : memref<64x64xf32, #tpu.memory_space<vmem>>, vector<64x64xf32>
    %cst_8 = arith.constant dense<0.000000e+00> : vector<256x64xf32>
    %9 = tpu.matmul %7, %8, %cst_8 {dimension_numbers = #tpu.dot_dimension_numbers<[1], [0], [0], [1], [0, 0, 1, 1], [], []>} : vector<256x64xf32>, vector<64x64xf32>, vector<256x64xf32> -> vector<256x64xf32>
    %c0_9 = arith.constant 0 : index
    %c0_10 = arith.constant 0 : index
    %10 = vector.load %arg5[%c0_9, %c0_10] : memref<1x64xf32, #tpu.memory_space<vmem>>, vector<1x64xf32>
    %11 = vector.broadcast %10 : vector<1x64xf32> to vector<256x64xf32>
    %12 = arith.addf %9, %11 : vector<256x64xf32>
    %cst_11 = arith.constant 0.000000e+00 : f32
    %13 = vector.broadcast %cst_11 : f32 to vector<256x64xf32>
    %14 = arith.maximumf %12, %13 : vector<256x64xf32>
    %c0_12 = arith.constant 0 : index
    %c0_13 = arith.constant 0 : index
    %15 = vector.load %arg6[%c0_12, %c0_13] : memref<64x4xf32, #tpu.memory_space<vmem>>, vector<64x4xf32>
    %cst_14 = arith.constant dense<0.000000e+00> : vector<256x4xf32>
    %16 = tpu.matmul %14, %15, %cst_14 {dimension_numbers = #tpu.dot_dimension_numbers<[1], [0], [0], [1], [0, 0, 1, 1], [], []>} : vector<256x64xf32>, vector<64x4xf32>, vector<256x4xf32> -> vector<256x4xf32>
    %c0_15 = arith.constant 0 : index
    %c0_16 = arith.constant 0 : index
    %17 = vector.load %arg7[%c0_15, %c0_16] : memref<1x4xf32, #tpu.memory_space<vmem>>, vector<1x4xf32>
    %18 = vector.broadcast %17 : vector<1x4xf32> to vector<256x4xf32>
    %19 = arith.addf %16, %18 : vector<256x4xf32>
    %c0_17 = arith.constant 0 : index
    %c0_18 = arith.constant 0 : index
    %20 = vector.load %arg8[%c0_17, %c0_18] : memref<256x4xf32, #tpu.memory_space<vmem>>, vector<256x4xf32>
    tpu.vector_store %arg8[%c0_17, %c0_18], %19 {strides = array<i32>} : memref<256x4xf32, #tpu.memory_space<vmem>>, vector<256x4xf32>,
    return
  }
  func.func @transform_0(%arg0: i32) -> (i32, i32) {
    %c0_i32 = arith.constant 0 : i32
    %c0_i32_0 = arith.constant 0 : i32
    return %arg0, %c0_i32 : i32, i32
  }
  func.func @transform_1(%arg0: i32) -> (i32, i32) {
    %c0_i32 = arith.constant 0 : i32
    %c0_i32_0 = arith.constant 0 : i32
    %c0_i32_1 = arith.constant 0 : i32
    return %c0_i32, %c0_i32_0 : i32, i32
  }
  func.func @transform_2(%arg0: i32) -> (i32, i32) {
    %c0_i32 = arith.constant 0 : i32
    %c0_i32_0 = arith.constant 0 : i32
    %c0_i32_1 = arith.constant 0 : i32
    return %c0_i32, %c0_i32_0 : i32, i32
  }
  func.func @transform_3(%arg0: i32) -> (i32, i32) {
    %c0_i32 = arith.constant 0 : i32
    %c0_i32_0 = arith.constant 0 : i32
    %c0_i32_1 = arith.constant 0 : i32
    return %c0_i32, %c0_i32_0 : i32, i32
  }
  func.func @transform_4(%arg0: i32) -> (i32, i32) {
    %c0_i32 = arith.constant 0 : i32
    %c0_i32_0 = arith.constant 0 : i32
    %c0_i32_1 = arith.constant 0 : i32
    return %c0_i32, %c0_i32_0 : i32, i32
  }
  func.func @transform_5(%arg0: i32) -> (i32, i32) {
    %c0_i32 = arith.constant 0 : i32
    %c0_i32_0 = arith.constant 0 : i32
    %c0_i32_1 = arith.constant 0 : i32
    return %c0_i32, %c0_i32_0 : i32, i32
  }
  func.func @transform_6(%arg0: i32) -> (i32, i32) {
    %c0_i32 = arith.constant 0 : i32
    %c0_i32_0 = arith.constant 0 : i32
    %c0_i32_1 = arith.constant 0 : i32
    return %c0_i32, %c0_i32_0 : i32, i32
  }
  func.func @transform_7(%arg0: i32) -> (i32, i32) {
    %c0_i32 = arith.constant 0 : i32
    %c0_i32_0 = arith.constant 0 : i32
    return %arg0, %c0_i32 : i32, i32
  }
}

</mosaic_0001>

<bundles_post_ra>
// kernel: tpu_custom_call.1
= control target key start
LH: loop header
LB: loop body
LE: loop exit
PB: predicated region body
PF: predicated region fallthrough
CT: control target
= control target key end

     0   :  { %s1929_s24 = smov 0   ;;  %s2320_s0 = inlined_call_operand.vmem [shape: f32[512,8], index: 0, kind: input, shape index: {}]   ;;  %s2321_s1 = inlined_call_operand.vmem [shape: f32[8,64], index: 1, kind: input, shape index: {}]   ;;  %s2322_s2 = inlined_call_operand.vmem [shape: f32[1,64], index: 2, kind: input, shape index: {}]   ;;  %s2323_s3 = inlined_call_operand.vmem [shape: f32[64,64], index: 3, kind: input, shape index: {}]   ;;  %s2324_s4 = inlined_call_operand.vmem [shape: f32[1,64], index: 4, kind: input, shape index: {}]   ;;  %s2325_s5 = inlined_call_operand.vmem [shape: f32[64,4], index: 5, kind: input, shape index: {}]   ;;  %s2326_s6 = inlined_call_operand.vmem [shape: f32[1,4], index: 6, kind: input, shape index: {}]   ;;  %s2327_s7 = inlined_call_operand.vmem [shape: f32[512,4], index: 7, kind: output, shape index: {}]  }
   0x1 LB: > { %s1470_s25 = sadd.s32 4294967295, %s1887_s24   ;;  %p1474_p0 = scmp.ge.s32.totalorder %s1887_s24, 1  ;;  %s1887_s24 = sphi %s1929_s24, %s17_s24  }
   0x2   : > { %p238_p1 = scmp.lt.s32.totalorder %s1887_s24, 3 }
   0x4   : > { %p239_p2 = pnand %p1474_p0, %p238_p1 }
   0x5   : > { %s1475_s28 = sshll.u32 (!%p239_p2), %s1470_s25, 5 }
   0x6   : > { %242 = sbr.rel (%p239_p2) target bundleno = 674 (0x2a2), region = 48  ;;  %p271_p3 = scmp.lt.s32.totalorder (!%p239_p2), %s1475_s28, 63 }
   0xb   : > { %v314_v0 = vld [vmem:[%s2321_s1] sm:$0xff]  ;;  %v683_v1 = vld [vmem:[%s2323_s3 + $0x38] sm:$0xff]  ;;  %s2329_s28 = smov (!%p271_p3, %s1475_s28), 63  ;;  %vm322_vm0 = vcmask 64512   ;;  %v682_v10 = vld [vmem:[%s2323_s3 + $0x30] sm:$0xff]  ;;  %vm691_vm1 = vcmask 523264  }
   0xc   : > { %1693 = vmatprep.subr.mxu0 %v314_v0  ;;  %1871 = vmatprep.subr.mxu1 %v314_v0  ;;  %s1476_s8 = sshll.u32 %s2329_s28, 3  ;;  %v681_v15 = vld [vmem:[%s2323_s3 + $0x28] sm:$0xff]  ;;  %v680_v17 = vld [vmem:[%s2323_s3 + $0x20] sm:$0xff]  ;;  %v679_v21 = vld [vmem:[%s2323_s3 + $0x18] sm:$0xff]  ;;  %vm1381_vm2 = vcmask 31744  }
   0xd   : > { %1694 = vmatpush3.msra.mxu0 %v314_v0  ;;  %1872 = vmatpush3.msra.mxu1 %v314_v0  ;;  %s1951_s11 = scalar_lea.vmem %s2320_s0, %s1476_s8  ;;  %v678_v26 = vld [vmem:[%s2323_s3 + $0x10] sm:$0xff]  ;;  %v677_v28 = vld [vmem:[%s2323_s3 + $0x8] sm:$0xff]  ;;  %v676_v40 = vld [vmem:[%s2323_s3] sm:$0xff]  ;;  %s2219_s10 = scalar_lea.vmem %s2327_s7, %s1476_s8 }
   0xe   : > { %1743 = vmatprep.subr.mxu1 %v683_v1  ;;  %v282_v2 = vld [vmem:[%s1951_s11] sm:$0xff]  ;;  %v283_v3 = vld [vmem:[%s1951_s11 + $0x8] sm:$0xff]  ;;  %v284_v4 = vld [vmem:[%s1951_s11 + $0x10] sm:$0xff] }
   0xf   : > { %1695 = vmatprep.mubr.msk.f32.mxu0 %vm322_vm0, %v282_v2  ;;  %v285_v5 = vld [vmem:[%s1951_s11 + $0x18] sm:$0xff]  ;;  %v286_v6 = vld [vmem:[%s1951_s11 + $0x20] sm:$0xff]  ;;  %v299_v8 = vld [vmem:[%s1951_s11 + $0x88] sm:$0xff] }
  0x10   : > { %1696 = vmatmul.mubr.msk.f32.vlgmr.msra.gmra.mxu0 %vm322_vm0, %v283_v3  ;;  %v298_v7 = vld [vmem:[%s1951_s11 + $0x80] sm:$0xff]  ;;  %v300_v9 = vld [vmem:[%s1951_s11 + $0x90] sm:$0xff]  ;;  %v287_v11 = vld [vmem:[%s1951_s11 + $0x28] sm:$0xff] }
  0x11   : > { %1698 = vmatprep.mubr.msk.f32.mxu0 %vm322_vm0, %v284_v4  ;;  %1719 = vmatprep.mubr.msk.f32.mxu1 %vm322_vm0, %v298_v7  ;;  %v288_v12 = vld [vmem:[%s1951_s11 + $0x30] sm:$0xff]  ;;  %v301_v13 = vld [vmem:[%s1951_s11 + $0x98] sm:$0xff]  ;;  %v302_v14 = vld [vmem:[%s1951_s11 + $0xa0] sm:$0xff] }
  0x12   : > { %1720 = vmatmul.mubr.msk.f32.vlgmr.msra.gmra.mxu1 %vm322_vm0, %v299_v8  ;;  %v289_v16 = vld [vmem:[%s1951_s11 + $0x38] sm:$0xff]  ;;  %v290_v18 = vld [vmem:[%s1951_s11 + $0x40] sm:$0xff]  ;;  %v303_v19 = vld [vmem:[%s1951_s11 + $0xa8] sm:$0xff] }
  0x13   : > { %1722 = vmatprep.mubr.msk.f32.mxu1 %vm322_vm0, %v300_v9  ;;  %1744 = vmatpush3.msra.mxu1 %v683_v1  ;;  %v304_v20 = vld [vmem:[%s1951_s11 + $0xb0] sm:$0xff]  ;;  %v291_v22 = vld [vmem:[%s1951_s11 + $0x48] sm:$0xff]  ;;  %v305_v24 = vld [vmem:[%s1951_s11 + $0xb8] sm:$0xff] }
  0x14   : > { %1699 = vmatmul.mubr.msk.f32.gmra.mxu0 %vm322_vm0, %v285_v5  ;;  %1745 = vmatprep.subr.mxu1 %v682_v10  ;;  %v292_v23 = vld [vmem:[%s1951_s11 + $0x50] sm:$0xff]  ;;  %v306_v25 = vld [vmem:[%s1951_s11 + $0xc0] sm:$0xff]  ;;  %v293_v27 = vld [vmem:[%s1951_s11 + $0x58] sm:$0xff] }
  0x15   : > { %1701 = vmatprep.mubr.msk.f32.mxu0 %vm322_vm0, %v286_v6  ;;  %1746 = vmatpush3.msra.mxu1 %v682_v10  ;;  %v294_v29 = vld [vmem:[%s1951_s11 + $0x60] sm:$0xff]  ;;  %v307_v30 = vld [vmem:[%s1951_s11 + $0xc8] sm:$0xff]  ;;  %v308_v31 = vld [vmem:[%s1951_s11 + $0xd0] sm:$0xff] }
  0x16   : > { %1723 = vmatmul.mubr.msk.f32.gmra.mxu1 %vm322_vm0, %v301_v13  ;;  %1747 = vmatprep.subr.mxu1 %v681_v15  ;;  %v295_v32 = vld [vmem:[%s1951_s11 + $0x68] sm:$0xff]  ;;  %v296_v33 = vld [vmem:[%s1951_s11 + $0x70] sm:$0xff]  ;;  %v309_v34 = vld [vmem:[%s1951_s11 + $0xd8] sm:$0xff] }
  0x17   : > { %1725 = vmatprep.mubr.msk.f32.mxu1 %vm322_vm0, %v302_v14  ;;  %1748 = vmatpush3.msra.mxu1 %v681_v15  ;;  %v310_v35 = vld [vmem:[%s1951_s11 + $0xe0] sm:$0xff]  ;;  %v297_v36 = vld [vmem:[%s1951_s11 + $0x78] sm:$0xff]  ;;  %v311_v37 = vld [vmem:[%s1951_s11 + $0xe8] sm:$0xff] }
  0x18   : > { %1702 = vmatmul.mubr.msk.f32.gmra.mxu0 %vm322_vm0, %v287_v11  ;;  %1749 = vmatprep.subr.mxu1 %v680_v17  ;;  %v312_v38 = vld [vmem:[%s1951_s11 + $0xf0] sm:$0xff]  ;;  %v313_v39 = vld [vmem:[%s1951_s11 + $0xf8] sm:$0xff]  ;;  %v1050_v43 = vld [vmem:[%s2325_s5 + $0x28] sm:$0xff] }
  0x19   : > { %1704 = vmatprep.mubr.msk.f32.mxu0 %vm322_vm0, %v288_v12  ;;  %1750 = vmatpush3.msra.mxu1 %v680_v17  ;;  %v1052_v41 = vld [vmem:[%s2325_s5 + $0x38] sm:$0xff]  ;;  %v1051_v42 = vld [vmem:[%s2325_s5 + $0x30] sm:$0xff]  ;;  %v1049_v44 = vld [vmem:[%s2325_s5 + $0x20] sm:$0xff] }
  0x1a   : > { %1726 = vmatmul.mubr.msk.f32.gmra.mxu1 %vm322_vm0, %v303_v19  ;;  %1751 = vmatprep.subr.mxu1 %v679_v21  ;;  %v1048_v45 = vld [vmem:[%s2325_s5 + $0x18] sm:$0xff]  ;;  %v1047_v46 = vld [vmem:[%s2325_s5 + $0x10] sm:$0xff]  ;;  %v1046_v47 = vld [vmem:[%s2325_s5 + $0x8] sm:$0xff] }
  0x1b   : > { %1728 = vmatprep.mubr.msk.f32.mxu1 %vm322_vm0, %v304_v20  ;;  %1752 = vmatpush3.msra.mxu1 %v679_v21  ;;  %v2062_v48 = vld [vmem:[%s2322_s2] ss:$0 sm:$0xff] }
  0x1c   : > { %1705 = vmatmul.mubr.msk.f32.gmra.mxu0 %vm322_vm0, %v289_v16  ;;  %1753 = vmatprep.subr.mxu1 %v678_v26 }
  0x1d   : > { %1707 = vmatprep.mubr.msk.f32.mxu0 %vm322_vm0, %v290_v18  ;;  %1754 = vmatpush3.msra.mxu1 %v678_v26 }
  0x1e   : > { %1729 = vmatmul.mubr.msk.f32.gmra.mxu1 %vm322_vm0, %v305_v24  ;;  %1755 = vmatprep.subr.mxu1 %v677_v28 }
  0x1f   : > { %1731 = vmatprep.mubr.msk.f32.mxu1 %vm322_vm0, %v306_v25  ;;  %1756 = vmatpush3.msra.mxu1 %v677_v28 }
  0x20   : > { %1708 = vmatmul.mubr.msk.f32.gmra.mxu0 %vm322_vm0, %v291_v22  ;;  %1757 = vmatprep.subr.mxu1 %v676_v40 }
  0x21   : > { %1710 = vmatprep.mubr.msk.f32.mxu0 %vm322_vm0, %v292_v23  ;;  %1758 = vmatpush3.msra.mxu1 %v676_v40 }
  0x22   : > { %1732 = vmatmul.mubr.msk.f32.gmra.mxu1 %vm322_vm0, %v307_v30  ;;  %1807 = vmatprep.subr.mxu0 %v1052_v41 }
  0x23   : > { %1734 = vmatprep.mubr.msk.f32.mxu1 %vm322_vm0, %v308_v31  ;;  %1808 = vmatpush3.msra.mxu0 %v1052_v41 }
  0x24   : > { %1711 = vmatmul.mubr.msk.f32.gmra.mxu0 %vm322_vm0, %v293_v27  ;;  %1809 = vmatprep.subr.mxu0 %v1051_v42 }
  0x25   : > { %1713 = vmatprep.mubr.msk.f32.mxu0 %vm322_vm0, %v294_v29  ;;  %1810 = vmatpush3.msra.mxu0 %v1051_v42 }
  0x26   : > { %1735 = vmatmul.mubr.msk.f32.gmra.mxu1 %vm322_vm0, %v309_v34  ;;  %1811 = vmatprep.subr.mxu0 %v1050_v43 }
  0x27   : > { %1737 = vmatprep.mubr.msk.f32.mxu1 %vm322_vm0, %v310_v35  ;;  %1812 = vmatpush3.msra.mxu0 %v1050_v43 }
  0x28   : > { %1714 = vmatmul.mubr.msk.f32.gmra.mxu0 %vm322_vm0, %v295_v32  ;;  %1813 = vmatprep.subr.mxu0 %v1049_v44 }
  0x29   : > { %1716 = vmatprep.mubr.msk.f32.mxu0 %vm322_vm0, %v296_v33  ;;  %1814 = vmatpush3.msra.mxu0 %v1049_v44 }
  0x2a   : > { %1738 = vmatmul.mubr.msk.f32.gmra.mxu1 %vm322_vm0, %v311_v37  ;;  %1815 = vmatprep.subr.mxu0 %v1048_v45 }
  0x2b   : > { %1740 = vmatprep.mubr.msk.f32.mxu1 %vm322_vm0, %v312_v38  ;;  %1816 = vmatpush3.msra.mxu0 %v1048_v45 }
  0x2c   : > { %1717 = vmatmul.mubr.msk.f32.gmra.mxu0 %vm322_vm0, %v297_v36  ;;  %1817 = vmatprep.subr.mxu0 %v1047_v46 }
  0x2d   : > { %1818 = vmatpush3.msra.mxu0 %v1047_v46 }
  0x2e   : > { %1741 = vmatmul.mubr.msk.f32.gmra.mxu1 %vm322_vm0, %v313_v39  ;;  %1819 = vmatprep.subr.mxu0 %v1046_v47 }
  0x2f   : > { %1820 = vmatpush3.msra.mxu0 %v1046_v47 }
  0xd0   : > { %v1697_v49 = vpop.f32.mrf.mxu0 }
  0xd1   : > { %v491_v50 = vadd.f32 %v1697_v49, %v2062_v48 }
  0xd2   : > { %v485_v51 = vpop.f32.mrf.mxu0  ;;  %v2066_v55 = vpop.f32.mrf.mxu1 }
  0xd3   : > { %v486_v52 = vadd.f32 %v2062_v48, %v485_v51  ;;  %v645_v56 = vmax.f32 %v491_v50, 0.0  ;;  %v571_v46 = vadd.f32 %v2066_v55, %v2062_v48 }
  0xd4   : > { %v1700_v53 = vpop.f32.mrf.mxu0  ;;  %v565_v60 = vpop.f32.mrf.mxu1 }
  0xd5   : > { %v644_v54 = vmax.f32 %v486_v52, 0.0  ;;  %v501_v57 = vadd.f32 %v1700_v53, %v2062_v48  ;;  %v566_v36 = vadd.f32 %v2062_v48, %v565_v60  ;;  %v661_v51 = vmax.f32 %v571_v46, 0.0 }
  0xd6   : > { %v495_v58 = vpop.f32.mrf.mxu0  ;;  %v2072_v63 = vpop.f32.mrf.mxu1 }
  0xd7   : > { %v496_v59 = vadd.f32 %v2062_v48, %v495_v58  ;;  %1759 = vmatprep.mubr.msk.f32.mxu1 %vm691_vm1, %v644_v54  ;;  %v647_v0 = vmax.f32 %v501_v57, 0.0  ;;  %v660_v43 = vmax.f32 %v566_v36, 0.0  ;;  %v581_v52 = vadd.f32 %v2072_v63, %v2062_v48 }
  0xd8   : > { %v1703_v61 = vpop.f32.mrf.mxu0  ;;  %1760 = vmatmul.mubr.msk.f32.vlgmr.msra.gmra.mxu1 %vm691_vm1, %v645_v56  ;;  %v575_v4 = vpop.f32.mrf.mxu1 }
  0xd9   : > { %v646_v62 = vmax.f32 %v496_v59, 0.0  ;;  %v511_v1 = vadd.f32 %v1703_v61, %v2062_v48  ;;  %v576_v44 = vadd.f32 %v2062_v48, %v575_v4  ;;  %v663_v56 = vmax.f32 %v581_v52, 0.0 }
  0xda   : > { %v505_v2 = vpop.f32.mrf.mxu0  ;;  %v2078_v7 = vpop.f32.mrf.mxu1 }
  0xdb   : > { %v506_v3 = vadd.f32 %v2062_v48, %v505_v2  ;;  %1762 = vmatprep.mubr.msk.f32.mxu1 %vm691_vm1, %v646_v62  ;;  %v649_v8 = vmax.f32 %v511_v1, 0.0  ;;  %v662_v49 = vmax.f32 %v576_v44, 0.0  ;;  %v591_v57 = vadd.f32 %v2078_v7, %v2062_v48 }
  0xdc   : > { %v1706_v5 = vpop.f32.mrf.mxu0  ;;  %1763 = vmatmul.mubr.msk.f32.gmra.mxu1 %vm691_vm1, %v647_v0  ;;  %v585_v12 = vpop.f32.mrf.mxu1 }
  0xdd   : > { %v648_v6 = vmax.f32 %v506_v3, 0.0  ;;  %v521_v9 = vadd.f32 %v1706_v5, %v2062_v48  ;;  %v586_v50 = vadd.f32 %v2062_v48, %v585_v12  ;;  %v665_v61 = vmax.f32 %v591_v57, 0.0 }
  0xde   : > { %v515_v10 = vpop.f32.mrf.mxu0  ;;  %v1730_v18 = vpop.f32.mrf.mxu1 }
  0xdf   : > { %v516_v11 = vadd.f32 %v2062_v48, %v515_v10  ;;  %1765 = vmatprep.mubr.msk.f32.mxu1 %vm691_vm1, %v648_v6  ;;  %v651_v15 = vmax.f32 %v521_v9, 0.0  ;;  %v664_v54 = vmax.f32 %v586_v50, 0.0  ;;  %v601_v62 = vadd.f32 %v1730_v18, %v2062_v48  ;;  %v1045_v18 = vld [vmem:[%s2325_s5] sm:$0xff] }
  0xe0   : > { %v1709_v13 = vpop.f32.mrf.mxu0  ;;  %1766 = vmatmul.mubr.msk.f32.gmra.mxu1 %vm691_vm1, %v649_v8  ;;  %v595_v25 = vpop.f32.mrf.mxu1  ;;  %1821 = vmatprep.subr.mxu0 %v1045_v18 }
  0xe1   : > { %v650_v14 = vmax.f32 %v516_v11, 0.0  ;;  %v531_v16 = vadd.f32 %v1709_v13, %v2062_v48  ;;  %v596_v55 = vadd.f32 %v2062_v48, %v595_v25  ;;  %v667_v2 = vmax.f32 %v601_v62, 0.0  ;;  %1822 = vmatpush3.msra.mxu0 %v1045_v18 }
  0xe2   : > { %v525_v17 = vpop.f32.mrf.mxu0  ;;  %v1733_v32 = vpop.f32.mrf.mxu1 }
  0xe3   : > { %v526_v19 = vadd.f32 %v2062_v48, %v525_v17  ;;  %1768 = vmatprep.mubr.msk.f32.mxu1 %vm691_vm1, %v650_v14  ;;  %v653_v22 = vmax.f32 %v531_v16, 0.0  ;;  %v666_v59 = vmax.f32 %v596_v55, 0.0  ;;  %v611_v3 = vadd.f32 %v1733_v32, %v2062_v48 }
  0xe4   : > { %v1712_v20 = vpop.f32.mrf.mxu0  ;;  %1769 = vmatmul.mubr.msk.f32.gmra.mxu1 %vm691_vm1, %v651_v15  ;;  %v605_v40 = vpop.f32.mrf.mxu1 }
  0xe5   : > { %v652_v21 = vmax.f32 %v526_v19, 0.0  ;;  %v541_v23 = vadd.f32 %v1712_v20, %v2062_v48  ;;  %v606_v60 = vadd.f32 %v2062_v48, %v605_v40  ;;  %v669_v7 = vmax.f32 %v611_v3, 0.0  ;;  %v2143_v19 = vld [vmem:[%s2324_s4] ss:$0 sm:$0xff] }
  0xe6   : > { %v535_v24 = vpop.f32.mrf.mxu0  ;;  %v1736_v47 = vpop.f32.mrf.mxu1 }
  0xe7   : > { %v536_v26 = vadd.f32 %v2062_v48, %v535_v24  ;;  %1771 = vmatprep.mubr.msk.f32.mxu1 %vm691_vm1, %v652_v21  ;;  %v655_v29 = vmax.f32 %v541_v23, 0.0  ;;  %v668_v0 = vmax.f32 %v606_v60, 0.0  ;;  %v621_v8 = vadd.f32 %v1736_v47, %v2062_v48 }
  0xe8   : > { %v1715_v27 = vpop.f32.mrf.mxu0  ;;  %1772 = vmatmul.mubr.msk.f32.gmra.mxu1 %vm691_vm1, %v653_v22  ;;  %v615_v53 = vpop.f32.mrf.mxu1 }
  0xe9   : > { %v654_v28 = vmax.f32 %v536_v26, 0.0  ;;  %v551_v30 = vadd.f32 %v1715_v27, %v2062_v48  ;;  %v616_v1 = vadd.f32 %v2062_v48, %v615_v53  ;;  %v671_v12 = vmax.f32 %v621_v8, 0.0 }
  0xea   : > { %v545_v31 = vpop.f32.mrf.mxu0  ;;  %v1739_v58 = vpop.f32.mrf.mxu1 }
  0xeb   : > { %v546_v33 = vadd.f32 %v2062_v48, %v545_v31  ;;  %1774 = vmatprep.mubr.msk.f32.mxu1 %vm691_vm1, %v654_v28  ;;  %v657_v37 = vmax.f32 %v551_v30, 0.0  ;;  %v670_v5 = vmax.f32 %v616_v1, 0.0  ;;  %v631_v13 = vadd.f32 %v1739_v58, %v2062_v48 }
  0xec   : > { %v1718_v34 = vpop.f32.mrf.mxu0  ;;  %1775 = vmatmul.mubr.msk.f32.gmra.mxu1 %vm691_vm1, %v655_v29  ;;  %v625_v63 = vpop.f32.mrf.mxu1 }
  0xed   : > { %v656_v35 = vmax.f32 %v546_v33, 0.0  ;;  %v561_v38 = vadd.f32 %v1718_v34, %v2062_v48  ;;  %v626_v6 = vadd.f32 %v2062_v48, %v625_v63  ;;  %v673_v15 = vmax.f32 %v631_v13, 0.0 }
  0xee   : > { %v555_v39 = vpop.f32.mrf.mxu0  ;;  %v1742_v4 = vpop.f32.mrf.mxu1 }
  0xef   : > { %v556_v41 = vadd.f32 %v2062_v48, %v555_v39  ;;  %1777 = vmatprep.mubr.msk.f32.mxu1 %vm691_vm1, %v656_v35  ;;  %v659_v45 = vmax.f32 %v561_v38, 0.0  ;;  %v672_v10 = vmax.f32 %v626_v6, 0.0  ;;  %v641_v16 = vadd.f32 %v1742_v4, %v2062_v48 }
  0xf0   : > { %1778 = vmatmul.mubr.msk.f32.gmra.mxu1 %vm691_vm1, %v657_v37  ;;  %v635_v9 = vpop.f32.mrf.mxu1 }
  0xf1   : > { %v658_v42 = vmax.f32 %v556_v41, 0.0  ;;  %v636_v11 = vadd.f32 %v2062_v48, %v635_v9  ;;  %v675_v17 = vmax.f32 %v641_v16, 0.0 }
  0xf3   : > { %1780 = vmatprep.mubr.msk.f32.mxu1 %vm691_vm1, %v658_v42  ;;  %v674_v14 = vmax.f32 %v636_v11, 0.0 }
  0xf4   : > { %1781 = vmatmul.mubr.msk.f32.gmra.mxu1 %vm691_vm1, %v659_v45 }
  0xf5   : > { %1783 = vmatprep.mubr.msk.f32.mxu1 %vm691_vm1, %v660_v43 }
  0xf8   : > { %1784 = vmatmul.mubr.msk.f32.gmra.mxu1 %vm691_vm1, %v661_v51 }
  0xf9   : > { %1786 = vmatprep.mubr.msk.f32.mxu1 %vm691_vm1, %v662_v49 }
  0xfc   : > { %1787 = vmatmul.mubr.msk.f32.gmra.mxu1 %vm691_vm1, %v663_v56 }
  0xfd   : > { %1789 = vmatprep.mubr.msk.f32.mxu1 %vm691_vm1, %v664_v54 }
 0x100   : > { %1790 = vmatmul.mubr.msk.f32.gmra.mxu1 %vm691_vm1, %v665_v61 }
 0x101   : > { %1792 = vmatprep.mubr.msk.f32.mxu1 %vm691_vm1, %v666_v59 }
 0x104   : > { %1793 = vmatmul.mubr.msk.f32.gmra.mxu1 %vm691_vm1, %v667_v2 }
 0x105   : > { %1795 = vmatprep.mubr.msk.f32.mxu1 %vm691_vm1, %v668_v0 }
 0x108   : > { %1796 = vmatmul.mubr.msk.f32.gmra.mxu1 %vm691_vm1, %v669_v7 }
 0x109   : > { %1798 = vmatprep.mubr.msk.f32.mxu1 %vm691_vm1, %v670_v5 }
 0x10c   : > { %1799 = vmatmul.mubr.msk.f32.gmra.mxu1 %vm691_vm1, %v671_v12 }
 0x10d   : > { %1801 = vmatprep.mubr.msk.f32.mxu1 %vm691_vm1, %v672_v10 }
 0x110   : > { %1802 = vmatmul.mubr.msk.f32.gmra.mxu1 %vm691_vm1, %v673_v15 }
 0x111   : > { %1804 = vmatprep.mubr.msk.f32.mxu1 %vm691_vm1, %v674_v14 }
 0x114   : > { %1805 = vmatmul.mubr.msk.f32.gmra.mxu1 %vm691_vm1, %v675_v17 }
 0x198   : > { %v1761_v20 = vpop.f32.mrf.mxu1 }
 0x199   : > { %v860_v48 = vadd.f32 %v1761_v20, %v2143_v19 }
 0x19a   : > { %v854_v21 = vpop.f32.mrf.mxu1 }
 0x19b   : > { %v855_v22 = vadd.f32 %v2143_v19, %v854_v21  ;;  %v1014_v25 = vmax.f32 %v860_v48, 0.0 }
 0x19c   : > { %v1764_v23 = vpop.f32.mrf.mxu1 }
 0x19d   : > { %v1013_v24 = vmax.f32 %v855_v22, 0.0  ;;  %v870_v26 = vadd.f32 %v1764_v23, %v2143_v19 }
 0x19e   : > { %v864_v27 = vpop.f32.mrf.mxu1 }
 0x19f   : > { %v865_v28 = vadd.f32 %v2143_v19, %v864_v27  ;;  %1823 = vmatprep.mubr.msk.f32.mxu0 %vm691_vm1, %v1013_v24  ;;  %v1016_v31 = vmax.f32 %v870_v26, 0.0 }
 0x1a0   : > { %v1767_v29 = vpop.f32.mrf.mxu1  ;;  %1824 = vmatmul.mubr.msk.f32.vlgmr.msra.gmra.mxu0 %vm691_vm1, %v1014_v25 }
 0x1a1   : > { %v1015_v30 = vmax.f32 %v865_v28, 0.0  ;;  %v880_v32 = vadd.f32 %v1767_v29, %v2143_v19 }
 0x1a2   : > { %v874_v33 = vpop.f32.mrf.mxu1 }
 0x1a3   : > { %v875_v34 = vadd.f32 %v2143_v19, %v874_v33  ;;  %1826 = vmatprep.mubr.msk.f32.mxu0 %vm691_vm1, %v1015_v30  ;;  %v1018_v37 = vmax.f32 %v880_v32, 0.0 }
 0x1a4   : > { %v1770_v35 = vpop.f32.mrf.mxu1  ;;  %1827 = vmatmul.mubr.msk.f32.gmra.mxu0 %vm691_vm1, %v1016_v31 }
 0x1a5   : > { %v1017_v36 = vmax.f32 %v875_v34, 0.0  ;;  %v890_v38 = vadd.f32 %v1770_v35, %v2143_v19 }
 0x1a6   : > { %v884_v39 = vpop.f32.mrf.mxu1 }
 0x1a7   : > { %v885_v40 = vadd.f32 %v2143_v19, %v884_v39  ;;  %1829 = vmatprep.mubr.msk.f32.mxu0 %vm691_vm1, %v1017_v36  ;;  %v1020_v43 = vmax.f32 %v890_v38, 0.0 }
 0x1a8   : > { %v1773_v41 = vpop.f32.mrf.mxu1  ;;  %1830 = vmatmul.mubr.msk.f32.gmra.mxu0 %vm691_vm1, %v1018_v37 }
 0x1a9   : > { %v1019_v42 = vmax.f32 %v885_v40, 0.0  ;;  %v900_v44 = vadd.f32 %v1773_v41, %v2143_v19 }
 0x1aa   : > { %v894_v45 = vpop.f32.mrf.mxu1 }
 0x1ab   : > { %v895_v46 = vadd.f32 %v2143_v19, %v894_v45  ;;  %1832 = vmatprep.mubr.msk.f32.mxu0 %vm691_vm1, %v1019_v42  ;;  %v1022_v50 = vmax.f32 %v900_v44, 0.0 }
 0x1ac   : > { %v1776_v47 = vpop.f32.mrf.mxu1  ;;  %1833 = vmatmul.mubr.msk.f32.gmra.mxu0 %vm691_vm1, %v1020_v43 }
 0x1ad   : > { %v1021_v49 = vmax.f32 %v895_v46, 0.0  ;;  %v910_v51 = vadd.f32 %v1776_v47, %v2143_v19 }
 0x1ae   : > { %v904_v52 = vpop.f32.mrf.mxu1 }
 0x1af   : > { %v905_v53 = vadd.f32 %v2143_v19, %v904_v52  ;;  %1835 = vmatprep.mubr.msk.f32.mxu0 %vm691_vm1, %v1021_v49  ;;  %v1024_v56 = vmax.f32 %v910_v51, 0.0 }
 0x1b0   : > { %v1779_v54 = vpop.f32.mrf.mxu1  ;;  %1836 = vmatmul.mubr.msk.f32.gmra.mxu0 %vm691_vm1, %v1022_v50 }
 0x1b1   : > { %v1023_v55 = vmax.f32 %v905_v53, 0.0  ;;  %v920_v57 = vadd.f32 %v1779_v54, %v2143_v19  ;;  %v2212_v53 = vld [vmem:[%s2326_s6] ss:$0 sm:$0xff] }
 0x1b2   : > { %v914_v58 = vpop.f32.mrf.mxu1 }
 0x1b3   : > { %v915_v59 = vadd.f32 %v2143_v19, %v914_v58  ;;  %1838 = vmatprep.mubr.msk.f32.mxu0 %vm691_vm1, %v1023_v55  ;;  %v1026_v62 = vmax.f32 %v920_v57, 0.0 }
 0x1b4   : > { %v1782_v60 = vpop.f32.mrf.mxu1  ;;  %1839 = vmatmul.mubr.msk.f32.gmra.mxu0 %vm691_vm1, %v1024_v56 }
 0x1b5   : > { %v1025_v61 = vmax.f32 %v915_v59, 0.0  ;;  %v930_v63 = vadd.f32 %v1782_v60, %v2143_v19 }
 0x1b6   : > { %v924_v0 = vpop.f32.mrf.mxu1 }
 0x1b7   : > { %v925_v1 = vadd.f32 %v2143_v19, %v924_v0  ;;  %1841 = vmatprep.mubr.msk.f32.mxu0 %vm691_vm1, %v1025_v61  ;;  %v1028_v4 = vmax.f32 %v930_v63, 0.0 }
 0x1b8   : > { %v1785_v2 = vpop.f32.mrf.mxu1  ;;  %1842 = vmatmul.mubr.msk.f32.gmra.mxu0 %vm691_vm1, %v1026_v62 }
 0x1b9   : > { %v1027_v3 = vmax.f32 %v925_v1, 0.0  ;;  %v940_v5 = vadd.f32 %v1785_v2, %v2143_v19 }
 0x1ba   : > { %v934_v6 = vpop.f32.mrf.mxu1 }
 0x1bb   : > { %v935_v7 = vadd.f32 %v2143_v19, %v934_v6  ;;  %1844 = vmatprep.mubr.msk.f32.mxu0 %vm691_vm1, %v1027_v3  ;;  %v1030_v10 = vmax.f32 %v940_v5, 0.0 }
 0x1bc   : > { %v1788_v8 = vpop.f32.mrf.mxu1  ;;  %1845 = vmatmul.mubr.msk.f32.gmra.mxu0 %vm691_vm1, %v1028_v4 }
 0x1bd   : > { %v1029_v9 = vmax.f32 %v935_v7, 0.0  ;;  %v950_v11 = vadd.f32 %v1788_v8, %v2143_v19 }
 0x1be   : > { %v944_v12 = vpop.f32.mrf.mxu1 }
 0x1bf   : > { %v945_v13 = vadd.f32 %v2143_v19, %v944_v12  ;;  %1847 = vmatprep.mubr.msk.f32.mxu0 %vm691_vm1, %v1029_v9  ;;  %v1032_v16 = vmax.f32 %v950_v11, 0.0 }
 0x1c0   : > { %v1791_v14 = vpop.f32.mrf.mxu1  ;;  %1848 = vmatmul.mubr.msk.f32.gmra.mxu0 %vm691_vm1, %v1030_v10 }
 0x1c1   : > { %v1031_v15 = vmax.f32 %v945_v13, 0.0  ;;  %v960_v17 = vadd.f32 %v1791_v14, %v2143_v19 }
 0x1c2   : > { %v954_v18 = vpop.f32.mrf.mxu1 }
 0x1c3   : > { %v955_v20 = vadd.f32 %v2143_v19, %v954_v18  ;;  %1850 = vmatprep.mubr.msk.f32.mxu0 %vm691_vm1, %v1031_v15  ;;  %v1034_v22 = vmax.f32 %v960_v17, 0.0 }
 0x1c4   : > { %v1794_v48 = vpop.f32.mrf.mxu1  ;;  %1851 = vmatmul.mubr.msk.f32.gmra.mxu0 %vm691_vm1, %v1032_v16 }
 0x1c5   : > { %v1033_v21 = vmax.f32 %v955_v20, 0.0  ;;  %v970_v23 = vadd.f32 %v1794_v48, %v2143_v19 }
 0x1c6   : > { %v964_v24 = vpop.f32.mrf.mxu1 }
 0x1c7   : > { %v965_v25 = vadd.f32 %v2143_v19, %v964_v24  ;;  %1853 = vmatprep.mubr.msk.f32.mxu0 %vm691_vm1, %v1033_v21  ;;  %v1036_v28 = vmax.f32 %v970_v23, 0.0 }
 0x1c8   : > { %v1797_v26 = vpop.f32.mrf.mxu1  ;;  %1854 = vmatmul.mubr.msk.f32.gmra.mxu0 %vm691_vm1, %v1034_v22 }
 0x1c9   : > { %v1035_v27 = vmax.f32 %v965_v25, 0.0  ;;  %v980_v29 = vadd.f32 %v1797_v26, %v2143_v19 }
 0x1ca   : > { %v974_v30 = vpop.f32.mrf.mxu1 }
 0x1cb   : > { %v975_v31 = vadd.f32 %v2143_v19, %v974_v30  ;;  %1856 = vmatprep.mubr.msk.f32.mxu0 %vm691_vm1, %v1035_v27  ;;  %v1038_v34 = vmax.f32 %v980_v29, 0.0 }
 0x1cc   : > { %v1800_v32 = vpop.f32.mrf.mxu1  ;;  %1857 = vmatmul.mubr.msk.f32.gmra.mxu0 %vm691_vm1, %v1036_v28 }
 0x1cd   : > { %v1037_v33 = vmax.f32 %v975_v31, 0.0  ;;  %v990_v35 = vadd.f32 %v1800_v32, %v2143_v19 }
 0x1ce   : > { %v984_v36 = vpop.f32.mrf.mxu1 }
 0x1cf   : > { %v985_v37 = vadd.f32 %v2143_v19, %v984_v36  ;;  %1859 = vmatprep.mubr.msk.f32.mxu0 %vm691_vm1, %v1037_v33  ;;  %v1040_v40 = vmax.f32 %v990_v35, 0.0 }
 0x1d0   : > { %v1803_v38 = vpop.f32.mrf.mxu1  ;;  %1860 = vmatmul.mubr.msk.f32.gmra.mxu0 %vm691_vm1, %v1038_v34 }
 0x1d1   : > { %v1039_v39 = vmax.f32 %v985_v37, 0.0  ;;  %v1000_v41 = vadd.f32 %v1803_v38, %v2143_v19 }
 0x1d2   : > { %v994_v42 = vpop.f32.mrf.mxu1 }
 0x1d3   : > { %v995_v43 = vadd.f32 %v2143_v19, %v994_v42  ;;  %1862 = vmatprep.mubr.msk.f32.mxu0 %vm691_vm1, %v1039_v39  ;;  %v1042_v46 = vmax.f32 %v1000_v41, 0.0 }
 0x1d4   : > { %v1806_v44 = vpop.f32.mrf.mxu1  ;;  %1863 = vmatmul.mubr.msk.f32.gmra.mxu0 %vm691_vm1, %v1040_v40 }
 0x1d5   : > { %v1041_v45 = vmax.f32 %v995_v43, 0.0  ;;  %v1010_v47 = vadd.f32 %v1806_v44, %v2143_v19 }
 0x1d6   : > { %v1004_v49 = vpop.f32.mrf.mxu1 }
 0x1d7   : > { %v1005_v50 = vadd.f32 %v2143_v19, %v1004_v49  ;;  %1865 = vmatprep.mubr.msk.f32.mxu0 %vm691_vm1, %v1041_v45  ;;  %v1044_v52 = vmax.f32 %v1010_v47, 0.0 }
 0x1d8   : > { %1866 = vmatmul.mubr.msk.f32.gmra.mxu0 %vm691_vm1, %v1042_v46 }
 0x1d9   : > { %v1043_v51 = vmax.f32 %v1005_v50, 0.0 }
 0x1db   : > { %1868 = vmatprep.mubr.msk.f32.mxu0 %vm691_vm1, %v1043_v51 }
 0x1dc   : > { %1869 = vmatmul.mubr.msk.f32.gmra.mxu0 %vm691_vm1, %v1044_v52 }
 0x260   : > { %v1825_v19 = vpop.f32.mrf.mxu0 }
 0x261   : > { %v1228_v54 = vadd.f32 %v1825_v19, %v2212_v53 }
 0x262   : > { %v1222_v55 = vpop.f32.mrf.mxu0 }
 0x263   : > { %1383 = vst.msk [vmem:[%s2219_s10 + $0x8] sm:$0xff] %vm1381_vm2, %v1228_v54  ;;  %v1223_v56 = vadd.f32 %v2212_v53, %v1222_v55 }
 0x264   : > { %v1828_v57 = vpop.f32.mrf.mxu0 }
 0x265   : > { %1382 = vst.msk [vmem:[%s2219_s10] sm:$0xff] %vm1381_vm2, %v1223_v56  ;;  %v1238_v58 = vadd.f32 %v1828_v57, %v2212_v53 }
 0x266   : > { %v1232_v59 = vpop.f32.mrf.mxu0 }
 0x267   : > { %1385 = vst.msk [vmem:[%s2219_s10 + $0x18] sm:$0xff] %vm1381_vm2, %v1238_v58  ;;  %v1233_v60 = vadd.f32 %v2212_v53, %v1232_v59 }
 0x268   : > { %v1831_v61 = vpop.f32.mrf.mxu0 }
 0x269   : > { %1384 = vst.msk [vmem:[%s2219_s10 + $0x10] sm:$0xff] %vm1381_vm2, %v1233_v60  ;;  %v1248_v62 = vadd.f32 %v1831_v61, %v2212_v53 }
 0x26a   : > { %v1242_v63 = vpop.f32.mrf.mxu0 }
 0x26b   : > { %1387 = vst.msk [vmem:[%s2219_s10 + $0x28] sm:$0xff] %vm1381_vm2, %v1248_v62  ;;  %v1243_v0 = vadd.f32 %v2212_v53, %v1242_v63 }
 0x26c   : > { %v1834_v1 = vpop.f32.mrf.mxu0 }
 0x26d   : > { %1386 = vst.msk [vmem:[%s2219_s10 + $0x20] sm:$0xff] %vm1381_vm2, %v1243_v0  ;;  %v1258_v2 = vadd.f32 %v1834_v1, %v2212_v53 }
 0x26e   : > { %v1252_v3 = vpop.f32.mrf.mxu0 }
 0x26f   : > { %1389 = vst.msk [vmem:[%s2219_s10 + $0x38] sm:$0xff] %vm1381_vm2, %v1258_v2  ;;  %v1253_v4 = vadd.f32 %v2212_v53, %v1252_v3 }
 0x270   : > { %v1837_v5 = vpop.f32.mrf.mxu0 }
 0x271   : > { %1388 = vst.msk [vmem:[%s2219_s10 + $0x30] sm:$0xff] %vm1381_vm2, %v1253_v4  ;;  %v1268_v6 = vadd.f32 %v1837_v5, %v2212_v53 }
 0x272   : > { %v1262_v7 = vpop.f32.mrf.mxu0 }
 0x273   : > { %1391 = vst.msk [vmem:[%s2219_s10 + $0x48] sm:$0xff] %vm1381_vm2, %v1268_v6  ;;  %v1263_v8 = vadd.f32 %v2212_v53, %v1262_v7 }
 0x274   : > { %v1840_v9 = vpop.f32.mrf.mxu0 }
 0x275   : > { %1390 = vst.msk [vmem:[%s2219_s10 + $0x40] sm:$0xff] %vm1381_vm2, %v1263_v8  ;;  %v1278_v10 = vadd.f32 %v1840_v9, %v2212_v53 }
 0x276   : > { %v1272_v11 = vpop.f32.mrf.mxu0 }
 0x277   : > { %1393 = vst.msk [vmem:[%s2219_s10 + $0x58] sm:$0xff] %vm1381_vm2, %v1278_v10  ;;  %v1273_v12 = vadd.f32 %v2212_v53, %v1272_v11 }
 0x278   : > { %v1843_v13 = vpop.f32.mrf.mxu0 }
 0x279   : > { %1392 = vst.msk [vmem:[%s2219_s10 + $0x50] sm:$0xff] %vm1381_vm2, %v1273_v12  ;;  %v1288_v14 = vadd.f32 %v1843_v13, %v2212_v53 }
 0x27a   : > { %v1282_v15 = vpop.f32.mrf.mxu0 }
 0x27b   : > { %1395 = vst.msk [vmem:[%s2219_s10 + $0x68] sm:$0xff] %vm1381_vm2, %v1288_v14  ;;  %v1283_v16 = vadd.f32 %v2212_v53, %v1282_v15 }
 0x27c   : > { %v1846_v17 = vpop.f32.mrf.mxu0 }
 0x27d   : > { %1394 = vst.msk [vmem:[%s2219_s10 + $0x60] sm:$0xff] %vm1381_vm2, %v1283_v16  ;;  %v1298_v18 = vadd.f32 %v1846_v17, %v2212_v53 }
 0x27e   : > { %v1292_v20 = vpop.f32.mrf.mxu0 }
 0x27f   : > { %1397 = vst.msk [vmem:[%s2219_s10 + $0x78] sm:$0xff] %vm1381_vm2, %v1298_v18  ;;  %v1293_v48 = vadd.f32 %v2212_v53, %v1292_v20 }
 0x280   : > { %v1849_v21 = vpop.f32.mrf.mxu0 }
 0x281   : > { %1396 = vst.msk [vmem:[%s2219_s10 + $0x70] sm:$0xff] %vm1381_vm2, %v1293_v48  ;;  %v1308_v22 = vadd.f32 %v1849_v21, %v2212_v53 }
 0x282   : > { %v1302_v23 = vpop.f32.mrf.mxu0 }
 0x283   : > { %1399 = vst.msk [vmem:[%s2219_s10 + $0x88] sm:$0xff] %vm1381_vm2, %v1308_v22  ;;  %v1303_v24 = vadd.f32 %v2212_v53, %v1302_v23 }
 0x284   : > { %v1852_v25 = vpop.f32.mrf.mxu0 }
 0x285   : > { %1398 = vst.msk [vmem:[%s2219_s10 + $0x80] sm:$0xff] %vm1381_vm2, %v1303_v24  ;;  %v1318_v26 = vadd.f32 %v1852_v25, %v2212_v53 }
 0x286   : > { %v1312_v27 = vpop.f32.mrf.mxu0 }
 0x287   : > { %1401 = vst.msk [vmem:[%s2219_s10 + $0x98] sm:$0xff] %vm1381_vm2, %v1318_v26  ;;  %v1313_v28 = vadd.f32 %v2212_v53, %v1312_v27 }
 0x288   : > { %v1855_v29 = vpop.f32.mrf.mxu0 }
 0x289   : > { %1400 = vst.msk [vmem:[%s2219_s10 + $0x90] sm:$0xff] %vm1381_vm2, %v1313_v28  ;;  %v1328_v30 = vadd.f32 %v1855_v29, %v2212_v53 }
 0x28a   : > { %v1322_v31 = vpop.f32.mrf.mxu0 }
 0x28b   : > { %1403 = vst.msk [vmem:[%s2219_s10 + $0xa8] sm:$0xff] %vm1381_vm2, %v1328_v30  ;;  %v1323_v32 = vadd.f32 %v2212_v53, %v1322_v31 }
 0x28c   : > { %v1858_v33 = vpop.f32.mrf.mxu0 }
 0x28d   : > { %1402 = vst.msk [vmem:[%s2219_s10 + $0xa0] sm:$0xff] %vm1381_vm2, %v1323_v32  ;;  %v1338_v34 = vadd.f32 %v1858_v33, %v2212_v53 }
 0x28e   : > { %v1332_v35 = vpop.f32.mrf.mxu0 }
 0x28f   : > { %1405 = vst.msk [vmem:[%s2219_s10 + $0xb8] sm:$0xff] %vm1381_vm2, %v1338_v34  ;;  %v1333_v36 = vadd.f32 %v2212_v53, %v1332_v35 }
 0x290   : > { %v1861_v37 = vpop.f32.mrf.mxu0 }
 0x291   : > { %1404 = vst.msk [vmem:[%s2219_s10 + $0xb0] sm:$0xff] %vm1381_vm2, %v1333_v36  ;;  %v1348_v38 = vadd.f32 %v1861_v37, %v2212_v53 }
 0x292   : > { %v1342_v39 = vpop.f32.mrf.mxu0 }
 0x293   : > { %1407 = vst.msk [vmem:[%s2219_s10 + $0xc8] sm:$0xff] %vm1381_vm2, %v1348_v38  ;;  %v1343_v40 = vadd.f32 %v2212_v53, %v1342_v39 }
 0x294   : > { %v1864_v41 = vpop.f32.mrf.mxu0 }
 0x295   : > { %1406 = vst.msk [vmem:[%s2219_s10 + $0xc0] sm:$0xff] %vm1381_vm2, %v1343_v40  ;;  %v1358_v42 = vadd.f32 %v1864_v41, %v2212_v53 }
 0x296   : > { %v1352_v43 = vpop.f32.mrf.mxu0 }
 0x297   : > { %1409 = vst.msk [vmem:[%s2219_s10 + $0xd8] sm:$0xff] %vm1381_vm2, %v1358_v42  ;;  %v1353_v44 = vadd.f32 %v2212_v53, %v1352_v43 }
 0x298   : > { %v1867_v45 = vpop.f32.mrf.mxu0 }
 0x299   : > { %1408 = vst.msk [vmem:[%s2219_s10 + $0xd0] sm:$0xff] %vm1381_vm2, %v1353_v44  ;;  %v1368_v46 = vadd.f32 %v1867_v45, %v2212_v53 }
 0x29a   : > { %v1362_v47 = vpop.f32.mrf.mxu0 }
 0x29b   : > { %1411 = vst.msk [vmem:[%s2219_s10 + $0xe8] sm:$0xff] %vm1381_vm2, %v1368_v46  ;;  %v1363_v49 = vadd.f32 %v2212_v53, %v1362_v47 }
 0x29c   : > { %v1870_v50 = vpop.f32.mrf.mxu0 }
 0x29d   : > { %1410 = vst.msk [vmem:[%s2219_s10 + $0xe0] sm:$0xff] %vm1381_vm2, %v1363_v49  ;;  %v1378_v51 = vadd.f32 %v1870_v50, %v2212_v53 }
 0x29e   : > { %v1372_v52 = vpop.f32.mrf.mxu0 }
 0x29f   : > { %1413 = vst.msk [vmem:[%s2219_s10 + $0xf8] sm:$0xff] %vm1381_vm2, %v1378_v51  ;;  %v1373_v19 = vadd.f32 %v2212_v53, %v1372_v52 }
 0x2a1   : > { %1412 = vst.msk [vmem:[%s2219_s10 + $0xf0] sm:$0xff] %vm1381_vm2, %v1373_v19 }
 0x2a2 PF: > { %s17_s24 = sadd.s32 1, %s1887_s24  }
 0x2a3   : > { %p14_p4 = scmp.ge.s32.totalorder %s17_s24, 4  }
 0x2a5   :  { %16 = sbr.rel (!%p14_p4) target bundleno = 1 (0x1), region = 78 }

</bundles_post_ra>
